<compile_context>
chip_gen: v5e
topology: v5e:2x2
jax: 0.10.0
libtpu: 0.0.40
codegen_flags: <defaults>
</compile_context>

<pallas_src>
import jax
import jax.numpy as jnp
from jax.experimental import pallas as pl
from jax.experimental.pallas import tpu as pltpu


def _round_up(x, m):
    return (x + m - 1) // m * m


def _pad2(a, rows, cols):
    r, c = a.shape
    if r == rows and c == cols:
        return a
    return jnp.pad(a, ((0, rows - r), (0, cols - c)))


def _vmem_limit_bytes(need_bytes):
    # Explicit scoped-VMEM budget (default is only 16/32 MiB); clamp to the
    # smallest physical VMEM across generations (v7x: 64 MiB per TC).
    return int(min(max(need_bytes + (2 << 20), 16 << 20), 64 << 20))


# ----------------------------------------------------------------------------
# Parameters
# ----------------------------------------------------------------------------
def init_params(key, input_size, hidden_size, dtype=jnp.float32):
    """Init mimicking nn.Linear's U(-1/sqrt(fan_in), 1/sqrt(fan_in)).

    NOTE: matches the module's "Linear + Linear(bias=False)" semantics; this is
    nn.Linear init, not torch.nn.RNNCell init (which uses 1/sqrt(hidden) for
    all params).  Weights are stored (in_features, out_features), i.e. x @ W.
    """
    k1, k2, k3 = jax.random.split(key, 3)
    bound_in = 1.0 / jnp.sqrt(input_size)
    bound_hh = 1.0 / jnp.sqrt(hidden_size)
    w_in = jax.random.uniform(k1, (input_size, hidden_size), dtype,
                              minval=-bound_in, maxval=bound_in)
    b_in = jax.random.uniform(k2, (1, hidden_size), dtype,
                              minval=-bound_in, maxval=bound_in)
    w_hh = jax.random.uniform(k3, (hidden_size, hidden_size), dtype,
                              minval=-bound_hh, maxval=bound_hh)
    return w_in, b_in, w_hh


def prepare_params(w_in, b_in, w_hh, param_dtype=jnp.float32):
    """Pad parameters to lane-dense shapes ONCE (outside the per-step hot path).

    w_in: (I, H) -> (Ip, Hp);  w_hh: (H, H) -> (Hp, Hp);  b_in: (1, H) -> (1, Hp)
    with Ip = round_up(I, 128), Hp = round_up(H, 128).  Zero padding keeps the
    matmuls exact on the real lanes.  param_dtype=jnp.bfloat16 halves weight
    HBM bytes (accumulation stays f32 in the kernel).
    """
    I, H = w_in.shape
    Ip, Hp = _round_up(I, 128), _round_up(H, 128)
    w_in_p = _pad2(w_in, Ip, Hp).astype(param_dtype)
    w_hh_p = _pad2(w_hh, Hp, Hp).astype(param_dtype)
    b_p = _pad2(b_in, 1, Hp).astype(jnp.float32)   # bias added on the f32 acc
    return w_in_p, w_hh_p, b_p


def init_state(batch_size, hidden_size, dtype=jnp.float32):
    """Equivalent of RNNCell.init()."""
    return jnp.zeros((batch_size, hidden_size), dtype)


# ----------------------------------------------------------------------------
# Single-step kernel (exact RNNCell.forward semantics)
# ----------------------------------------------------------------------------
def rnn_cell_kernel(x_ref, h_ref, w_in_ref, w_hh_ref, b_ref, out_ref):
    # Two MXU dots into one f32 accumulator + VPU bias add + EUP tanh.
    pre = jnp.dot(x_ref[...], w_in_ref[...], preferred_element_type=jnp.float32)
    pre = pre + jnp.dot(h_ref[...], w_hh_ref[...],
                        preferred_element_type=jnp.float32)
    out_ref[...] = jnp.tanh(pre + b_ref[...]).astype(out_ref.dtype)


@jax.jit
def rnn_cell_forward(x, h, w_in_p, w_hh_p, b_p):
    """x: (B, I), h: (B, H); params pre-padded by prepare_params."""
    B, I = x.shape
    H = h.shape[1]
    Ip, Hp = w_in_p.shape

    # Fat batch tiles (multiple of 8 sublanes, up to 512 rows).
    block_b = min(512, _round_up(B, 8))
    Bp = _round_up(B, block_b)
    n_batch_tiles = Bp // block_b

    # Minimal zero-padding of activations (no concat; no-op when aligned).
    x_p = _pad2(x, Bp, Ip)
    h_p = _pad2(h, Bp, Hp)

    pbytes = w_in_p.dtype.itemsize
    w_bytes = (Ip * Hp + Hp * Hp) * pbytes + Hp * 4
    a_bytes = block_b * (Ip + 2 * Hp) * 4
    vmem = _vmem_limit_bytes(2 * w_bytes + 2 * a_bytes)

    # With only 1-2 batch tiles, sharding the batch axis across v7x's two
    # TensorCores just duplicates the weight DMAs of a weight-BW-bound op.
    dims = ("parallel",) if n_batch_tiles >= 4 else ("arbitrary",)

    out_p = pl.pallas_call(
        rnn_cell_kernel,
        out_shape=jax.ShapeDtypeStruct((Bp, Hp), x.dtype),
        grid_spec=pltpu.PrefetchScalarGridSpec(
            num_scalar_prefetch=0,
            grid=(n_batch_tiles,),
            in_specs=[
                pl.BlockSpec((block_b, Ip), lambda i: (i, 0)),
                pl.BlockSpec((block_b, Hp), lambda i: (i, 0)),
                pl.BlockSpec((Ip, Hp), lambda i: (0, 0)),   # resident weights
                pl.BlockSpec((Hp, Hp), lambda i: (0, 0)),   # resident weights
                pl.BlockSpec((1, Hp), lambda i: (0, 0)),    # resident bias
            ],
            out_specs=pl.BlockSpec((block_b, Hp), lambda i: (i, 0)),
        ),
        compiler_params=pltpu.CompilerParams(
            dimension_semantics=dims,
            vmem_limit_bytes=vmem),
    )(x_p, h_p, w_in_p, w_hh_p, b_p)

    out = out_p[:B, :H]
    # output and new_state are the same tensor (single kernel store).
    return out, out


# ----------------------------------------------------------------------------
# Full-sequence kernel: the whole time loop inside ONE pallas_call.
# Weights stay VMEM-resident across all T steps; h is carried in VMEM scratch.
# ----------------------------------------------------------------------------
def rnn_seq_kernel(x_ref, h0_ref, w_in_ref, w_hh_ref, b_ref, out_ref, h_scratch):
    t = pl.program_id(1)

    @pl.when(t == 0)
    def _():
        h_scratch[...] = h0_ref[...].astype(jnp.float32)

    x_t = x_ref[0]                                           # (block_b, Ip)
    pre = jnp.dot(x_t, w_in_ref[...], preferred_element_type=jnp.float32)
    pre = pre + jnp.dot(h_scratch[...], w_hh_ref[...],
                        preferred_element_type=jnp.float32)
    h_new = jnp.tanh(pre + b_ref[...])
    h_scratch[...] = h_new
    out_ref[0] = h_new.astype(out_ref.dtype)


@jax.jit
def rnn_forward_sequence(xs, h0, w_in_p, w_hh_p, b_p):
    """xs: (T, B, I), h0: (B, H).  Returns (per-step outputs (T,B,H), final state)."""
    T, B, I = xs.shape
    H = h0.shape[1]
    Ip, Hp = w_in_p.shape

    block_b = min(512, _round_up(B, 8))
    Bp = _round_up(B, block_b)
    n_batch_tiles = Bp // block_b

    if (Bp, Ip) != (B, I):
        xs = jnp.pad(xs, ((0, 0), (0, Bp - B), (0, Ip - I)))
    h0_p = _pad2(h0, Bp, Hp)

    pbytes = w_in_p.dtype.itemsize
    w_bytes = (Ip * Hp + Hp * Hp) * pbytes + Hp * 4
    a_bytes = block_b * (Ip + 3 * Hp) * 4                    # x, h0, out tiles + scratch
    vmem = _vmem_limit_bytes(2 * w_bytes + 2 * a_bytes)

    out_p = pl.pallas_call(
        rnn_seq_kernel,
        out_shape=jax.ShapeDtypeStruct((T, Bp, Hp), xs.dtype),
        grid_spec=pltpu.PrefetchScalarGridSpec(
            num_scalar_prefetch=0,
            grid=(n_batch_tiles, T),                         # time = inner (carried) axis
            in_specs=[
                pl.BlockSpec((1, block_b, Ip), lambda b, t: (t, b, 0)),
                pl.BlockSpec((block_b, Hp), lambda b, t: (b, 0)),
                pl.BlockSpec((Ip, Hp), lambda b, t: (0, 0)),   # resident across all T
                pl.BlockSpec((Hp, Hp), lambda b, t: (0, 0)),   # resident across all T
                pl.BlockSpec((1, Hp), lambda b, t: (0, 0)),    # resident bias
            ],
            out_specs=pl.BlockSpec((1, block_b, Hp), lambda b, t: (t, b, 0)),
            scratch_shapes=[pltpu.VMEM((block_b, Hp), jnp.float32)],
        ),
        compiler_params=pltpu.CompilerParams(
            dimension_semantics=("parallel", "arbitrary"),
            vmem_limit_bytes=vmem),
    )(xs, h0_p, w_in_p, w_hh_p, b_p)

    outputs = out_p[:, :B, :H]
    return outputs, outputs[-1]


# ----------------------------------------------------------------------------
# Plain-JAX references
# ----------------------------------------------------------------------------
def ref_cell(x, h, w_in, b_in, w_hh):
    hp = jax.lax.Precision.HIGHEST
    return jnp.tanh(jnp.dot(x, w_in, precision=hp) + b_in
                    + jnp.dot(h, w_hh, precision=hp))


def ref_sequence(xs, h0, w_in, b_in, w_hh):
    def step(h, x):
        h_new = ref_cell(x, h, w_in, b_in, w_hh)
        return h_new, h_new
    h_last, ys = jax.lax.scan(step, h0, xs)
    return ys, h_last


if __name__ == "__main__":
    batch, input_size, hidden_size, seq_len = 2, 16, 32, 8

    key = jax.random.PRNGKey(0)
    k_x, k_h, k_seq, k_p = jax.random.split(key, 4)

    w_in, b_in, w_hh = init_params(k_p, input_size, hidden_size)
    # Pad parameters once, outside the per-step hot path.
    w_in_p, w_hh_p, b_p = prepare_params(w_in, b_in, w_hh)

    # --- single step (RNNCell.forward) ---
    x = jax.random.normal(k_x, (batch, input_size), jnp.float32)
    h = jax.random.normal(k_h, (batch, hidden_size), jnp.float32) * 0.1
    output, new_state = rnn_cell_forward(x, h, w_in_p, w_hh_p, b_p)
    jax.block_until_ready((output, new_state))

    ref = ref_cell(x, h, w_in, b_in, w_hh)
    assert output.shape == (batch, hidden_size), "bad output shape"
    assert jnp.allclose(output, ref, atol=2e-3, rtol=2e-3), "mismatch vs reference"
    assert jnp.allclose(new_state, ref, atol=2e-3, rtol=2e-3), "state mismatch"

    # --- full sequence, time loop fused inside ONE pallas_call ---
    xs = jax.random.normal(k_seq, (seq_len, batch, input_size), jnp.float32)
    h0 = init_state(batch, hidden_size)                       # RNNCell.init()
    outputs, h_last = rnn_forward_sequence(xs, h0, w_in_p, w_hh_p, b_p)
    jax.block_until_ready((outputs, h_last))

    ref_ys, ref_h = ref_sequence(xs, h0, w_in, b_in, w_hh)
    assert outputs.shape == (seq_len, batch, hidden_size), "bad sequence shape"
    assert jnp.allclose(outputs, ref_ys, atol=2e-3, rtol=2e-3), "sequence mismatch"
    assert jnp.allclose(h_last, ref_h, atol=2e-3, rtol=2e-3), "final state mismatch"

    print("KERNEL_OK")
</pallas_src>

<mosaic_0001>
module attributes {stable_mosaic.version = 11 : i64} {
  func.func @rnn_cell_kernel(%arg0: i32, %arg1: memref<8x128xf32, #tpu.memory_space<vmem>>, %arg2: memref<8x128xf32, #tpu.memory_space<vmem>>, %arg3: memref<128x128xf32, #tpu.memory_space<vmem>>, %arg4: memref<128x128xf32, #tpu.memory_space<vmem>>, %arg5: memref<1x128xf32, #tpu.memory_space<vmem>>, %arg6: memref<8x128xf32, #tpu.memory_space<vmem>>) attributes {dimension_semantics = [#tpu.dimension_semantics<arbitrary>], iteration_bounds = array<i64: 1>, scalar_prefetch = 0 : i64, scratch_operands = 0 : i64, tpu.core_type = #tpu.core_type<tc>, window_params = [{transform_indices = @transform_0, window_bounds = array<i64: 8, 128>}, {transform_indices = @transform_1, window_bounds = array<i64: 8, 128>}, {pipeline_mode = #tpu.pipeline_mode<synchronous>, transform_indices = @transform_2, window_bounds = array<i64: 128, 128>}, {pipeline_mode = #tpu.pipeline_mode<synchronous>, transform_indices = @transform_3, window_bounds = array<i64: 128, 128>}, {pipeline_mode = #tpu.pipeline_mode<synchronous>, transform_indices = @transform_4, window_bounds = array<i64: 1, 128>}, {transform_indices = @transform_5, window_bounds = array<i64: 8, 128>}]} {
    %c0 = arith.constant 0 : index
    %c0_0 = arith.constant 0 : index
    %0 = vector.load %arg1[%c0, %c0_0] : memref<8x128xf32, #tpu.memory_space<vmem>>, vector<8x128xf32>
    %c0_1 = arith.constant 0 : index
    %c0_2 = arith.constant 0 : index
    %1 = vector.load %arg3[%c0_1, %c0_2] : memref<128x128xf32, #tpu.memory_space<vmem>>, vector<128x128xf32>
    %cst = arith.constant dense<0.000000e+00> : vector<8x128xf32>
    %2 = tpu.matmul %0, %1, %cst {dimension_numbers = #tpu.dot_dimension_numbers<[1], [0], [0], [1], [0, 0, 1, 1], [], []>} : vector<8x128xf32>, vector<128x128xf32>, vector<8x128xf32> -> vector<8x128xf32>
    %c0_3 = arith.constant 0 : index
    %c0_4 = arith.constant 0 : index
    %3 = vector.load %arg2[%c0_3, %c0_4] : memref<8x128xf32, #tpu.memory_space<vmem>>, vector<8x128xf32>
    %c0_5 = arith.constant 0 : index
    %c0_6 = arith.constant 0 : index
    %4 = vector.load %arg4[%c0_5, %c0_6] : memref<128x128xf32, #tpu.memory_space<vmem>>, vector<128x128xf32>
    %cst_7 = arith.constant dense<0.000000e+00> : vector<8x128xf32>
    %5 = tpu.matmul %3, %4, %cst_7 {dimension_numbers = #tpu.dot_dimension_numbers<[1], [0], [0], [1], [0, 0, 1, 1], [], []>} : vector<8x128xf32>, vector<128x128xf32>, vector<8x128xf32> -> vector<8x128xf32>
    %6 = arith.addf %2, %5 : vector<8x128xf32>
    %c0_8 = arith.constant 0 : index
    %c0_9 = arith.constant 0 : index
    %7 = vector.load %arg5[%c0_8, %c0_9] : memref<1x128xf32, #tpu.memory_space<vmem>>, vector<1x128xf32>
    %8 = vector.broadcast %7 : vector<1x128xf32> to vector<8x128xf32>
    %9 = arith.addf %6, %8 : vector<8x128xf32>
    %10 = math.tanh %9 : vector<8x128xf32>
    %c0_10 = arith.constant 0 : index
    %c0_11 = arith.constant 0 : index
    %11 = vector.load %arg6[%c0_10, %c0_11] : memref<8x128xf32, #tpu.memory_space<vmem>>, vector<8x128xf32>
    tpu.vector_store %arg6[%c0_10, %c0_11], %10 {strides = array<i32>} : memref<8x128xf32, #tpu.memory_space<vmem>>, vector<8x128xf32>,
    return
  }
  func.func @transform_0(%arg0: i32) -> (i32, i32) {
    %c0_i32 = arith.constant 0 : i32
    %c0_i32_0 = arith.constant 0 : i32
    return %arg0, %c0_i32 : i32, i32
  }
  func.func @transform_1(%arg0: i32) -> (i32, i32) {
    %c0_i32 = arith.constant 0 : i32
    %c0_i32_0 = arith.constant 0 : i32
    return %arg0, %c0_i32 : i32, i32
  }
  func.func @transform_2(%arg0: i32) -> (i32, i32) {
    %c0_i32 = arith.constant 0 : i32
    %c0_i32_0 = arith.constant 0 : i32
    %c0_i32_1 = arith.constant 0 : i32
    return %c0_i32, %c0_i32_0 : i32, i32
  }
  func.func @transform_3(%arg0: i32) -> (i32, i32) {
    %c0_i32 = arith.constant 0 : i32
    %c0_i32_0 = arith.constant 0 : i32
    %c0_i32_1 = arith.constant 0 : i32
    return %c0_i32, %c0_i32_0 : i32, i32
  }
  func.func @transform_4(%arg0: i32) -> (i32, i32) {
    %c0_i32 = arith.constant 0 : i32
    %c0_i32_0 = arith.constant 0 : i32
    %c0_i32_1 = arith.constant 0 : i32
    return %c0_i32, %c0_i32_0 : i32, i32
  }
  func.func @transform_5(%arg0: i32) -> (i32, i32) {
    %c0_i32 = arith.constant 0 : i32
    %c0_i32_0 = arith.constant 0 : i32
    return %arg0, %c0_i32 : i32, i32
  }
}

</mosaic_0001>

<bundles_post_ra>
// kernel: rnn_cell_forward.1
= control target key start
LH: loop header
LB: loop body
LE: loop exit
PB: predicated region body
PF: predicated region fallthrough
CT: control target
= control target key end

     0   :  { %10 = vsyncpa [#allocation3], 0  ;;  %s250_s0 = inlined_call_operand.vmem [shape: f32[8,128], index: 0, kind: input, shape index: {}]   ;;  %s251_s1 = inlined_call_operand.vmem [shape: f32[8,128], index: 1, kind: input, shape index: {}]   ;;  %s252_s2 = inlined_call_operand.hbm [shape: f32[128,128], index: 2, kind: input, shape index: {}]   ;;  %s253_s3 = inlined_call_operand.hbm [shape: f32[128,128], index: 3, kind: input, shape index: {}]   ;;  %s254_s4 = inlined_call_operand.vmem [shape: f32[1,128], index: 4, kind: input, shape index: {}]   ;;  %s255_s5 = inlined_call_operand.vmem [shape: f32[8,128], index: 5, kind: output, shape index: {}]  }
   0x1   :  { %s20_s20 = sshll.u32 %s252_s2, 4  ;;  %s21_s20 = int_to_ptr.hbm [resolvable:$true] %s20_s20 }
   0x2   :  { %11 = vsyncpa [#allocation5], 0  ;;  %s198_s21 = smov [#allocation2]   ;;  %s33_s25 = sshll.u32 %s253_s3, 4  ;;  %s34_s25 = int_to_ptr.hbm [resolvable:$true] %s33_s25 }
   0x3   :  { %s22_s22 = sshll.u32 %s198_s21, 4  ;;  %s199_s26 = smov 128   ;;  %s23_s22 = int_to_ptr.vmem [resolvable:$true] %s22_s22 }
   0x4   :  { %s200_s27 = smov 8   ;;  %s201_s28 = smov [#allocation4]  }
   0x5   :  { %28 = dma.hbm_to_vmem [thread:$0]  %s21_s20, 2048, %s23_s22, [#allocation3], %s199_s26, %s199_s26, %s200_s27  }
   0x6   :  { %s35_s29 = sshll.u32 %s201_s28, 4  ;;  %s36_s29 = int_to_ptr.vmem [resolvable:$true] %s35_s29 }
   0x7   :  { %41 = dma.hbm_to_vmem [thread:$0]  %s34_s25, 2048, %s36_s29, [#allocation5], %s199_s26, %s199_s26, %s200_s27  }
   0x8   :  { %194 = dma.done.wait [#allocation3], 2048  }
   0x9   :  { %195 = vsyncadd [#allocation3], 4294965248 }
   0xa   :  { %196 = dma.done.wait [#allocation5], 2048  }
   0xb   :  { %197 = vsyncadd [#allocation5], 4294965248  ;;  %v85_v0 = vld [vmem:[#allocation4 + $0x78] sm:$0xff]  ;;  %v84_v2 = vld [vmem:[#allocation4 + $0x70] sm:$0xff] }
   0xc   :  { %v68_v1 = vld [vmem:[#allocation2 + $0x78] sm:$0xff]  ;;  %86 = vmatpush.msra.mxu0 %v85_v0  ;;  %v67_v3 = vld [vmem:[#allocation2 + $0x70] sm:$0xff]  ;;  %v83_v4 = vld [vmem:[#allocation4 + $0x68] sm:$0xff] }
   0xd   :  { %106 = vmatpush.msra.mxu1 %v68_v1  ;;  %v66_v5 = vld [vmem:[#allocation2 + $0x68] sm:$0xff]  ;;  %v82_v6 = vld [vmem:[#allocation4 + $0x60] sm:$0xff]  ;;  %v81_v8 = vld [vmem:[#allocation4 + $0x58] sm:$0xff] }
   0xe   :  { %87 = vmatpush.msra.mxu0 %v84_v2  ;;  %v65_v7 = vld [vmem:[#allocation2 + $0x60] sm:$0xff]  ;;  %v64_v9 = vld [vmem:[#allocation2 + $0x58] sm:$0xff]  ;;  %v80_v10 = vld [vmem:[#allocation4 + $0x50] sm:$0xff] }
   0xf   :  { %107 = vmatpush.msra.mxu1 %v67_v3  ;;  %v63_v11 = vld [vmem:[#allocation2 + $0x50] sm:$0xff]  ;;  %v79_v12 = vld [vmem:[#allocation4 + $0x48] sm:$0xff]  ;;  %v78_v14 = vld [vmem:[#allocation4 + $0x40] sm:$0xff] }
  0x10   :  { %88 = vmatpush.msra.mxu0 %v83_v4  ;;  %v62_v13 = vld [vmem:[#allocation2 + $0x48] sm:$0xff]  ;;  %v61_v15 = vld [vmem:[#allocation2 + $0x40] sm:$0xff]  ;;  %v77_v16 = vld [vmem:[#allocation4 + $0x38] sm:$0xff] }
  0x11   :  { %108 = vmatpush.msra.mxu1 %v66_v5  ;;  %v60_v17 = vld [vmem:[#allocation2 + $0x38] sm:$0xff]  ;;  %v76_v18 = vld [vmem:[#allocation4 + $0x30] sm:$0xff]  ;;  %v75_v20 = vld [vmem:[#allocation4 + $0x28] sm:$0xff] }
  0x12   :  { %89 = vmatpush.msra.mxu0 %v82_v6  ;;  %v59_v19 = vld [vmem:[#allocation2 + $0x30] sm:$0xff]  ;;  %v58_v21 = vld [vmem:[#allocation2 + $0x28] sm:$0xff]  ;;  %v74_v22 = vld [vmem:[#allocation4 + $0x20] sm:$0xff] }
  0x13   :  { %109 = vmatpush.msra.mxu1 %v65_v7  ;;  %v57_v23 = vld [vmem:[#allocation2 + $0x20] sm:$0xff]  ;;  %v73_v24 = vld [vmem:[#allocation4 + $0x18] sm:$0xff]  ;;  %v72_v26 = vld [vmem:[#allocation4 + $0x10] sm:$0xff] }
  0x14   :  { %90 = vmatpush.msra.mxu0 %v81_v8  ;;  %v56_v25 = vld [vmem:[#allocation2 + $0x18] sm:$0xff]  ;;  %v55_v27 = vld [vmem:[#allocation2 + $0x10] sm:$0xff]  ;;  %v71_v28 = vld [vmem:[#allocation4 + $0x8] sm:$0xff] }
  0x15   :  { %110 = vmatpush.msra.mxu1 %v64_v9  ;;  %v54_v29 = vld [vmem:[#allocation2 + $0x8] sm:$0xff]  ;;  %v70_v30 = vld [vmem:[#allocation4] sm:$0xff] }
  0x16   :  { %91 = vmatpush.msra.mxu0 %v80_v10  ;;  %v53_v31 = vld [vmem:[#allocation2] sm:$0xff] }
  0x17   :  { %111 = vmatpush.msra.mxu1 %v63_v11  ;;  %v69_v32 = vld [vmem:[%s251_s1] sm:$0xff] }
  0x18   :  { %92 = vmatpush.msra.mxu0 %v79_v12  ;;  %v52_v33 = vld [vmem:[%s250_s0] sm:$0xff] }
  0x19   :  { %112 = vmatpush.msra.mxu1 %v62_v13  ;;  %v143_v34 = vld [vmem:[%s254_s4] ss:$0 sm:$0xff] }
  0x1a   :  { %93 = vmatpush.msra.mxu0 %v78_v14 }
  0x1b   :  { %113 = vmatpush.msra.mxu1 %v61_v15 }
  0x1c   :  { %94 = vmatpush.msra.mxu0 %v77_v16 }
  0x1d   :  { %114 = vmatpush.msra.mxu1 %v60_v17 }
  0x1e   :  { %95 = vmatpush.msra.mxu0 %v76_v18 }
  0x1f   :  { %115 = vmatpush.msra.mxu1 %v59_v19 }
  0x20   :  { %96 = vmatpush.msra.mxu0 %v75_v20 }
  0x21   :  { %116 = vmatpush.msra.mxu1 %v58_v21 }
  0x22   :  { %97 = vmatpush.msra.mxu0 %v74_v22 }
  0x23   :  { %117 = vmatpush.msra.mxu1 %v57_v23 }
  0x24   :  { %98 = vmatpush.msra.mxu0 %v73_v24 }
  0x25   :  { %118 = vmatpush.msra.mxu1 %v56_v25 }
  0x26   :  { %99 = vmatpush.msra.mxu0 %v72_v26 }
  0x27   :  { %119 = vmatpush.msra.mxu1 %v55_v27 }
  0x28   :  { %100 = vmatpush.msra.mxu0 %v71_v28 }
  0x29   :  { %120 = vmatpush.msra.mxu1 %v54_v29 }
  0x2a   :  { %101 = vmatpush.msra.mxu0 %v70_v30 }
  0x2b   :  { %121 = vmatpush.msra.mxu1 %v53_v31  ;;  %102 = vmatmul.f32.vlgmr.msra.gmra.mxu0 %v69_v32 }
  0x2c   :  { %122 = vmatmul.f32.vlgmr.msra.gmra.mxu1 %v52_v33 }
  0xa8   :  { %v103_v35 = vpop.f32.mrf.mxu0 }
  0xa9   :  { %v123_v36 = vpop.f32.mrf.mxu1 }
  0xaa   :  { %v124_v37 = vadd.f32 %v123_v36, %v103_v35 }
  0xac   :  { %v130_v38 = vadd.f32 %v143_v34, %v124_v37 }
  0xae   :  { %144 = vtanh.f32 %v130_v38 }
  0xb4   :  { %v145_v39 = vpop.eup %144 }
  0xb5   :  { %132 = vst [vmem:[%s255_s5] sm:$0xff] %v145_v39 }
  0xb6   :  { %137 = vsyncpa [#allocation3], 1 }
  0xb7   :  { %138 = vsyncpa [#allocation5], 1 }

</bundles_post_ra>
